<compile_context>
chip_gen: v5e
topology: v5e:2x2
jax: 0.10.0
libtpu: 0.0.40
codegen_flags: <defaults>
</compile_context>

<pallas_src>
import math

import jax
import jax.numpy as jnp
from jax.experimental import pallas as pl
from jax.experimental.pallas import tpu as pltpu


def _build_sinusoidal_pe(max_seq_len: int, d_model: int) -> jnp.ndarray:
    """Deterministic (non-learnable) sinusoidal table, matching the PyTorch init."""
    position = jnp.arange(max_seq_len, dtype=jnp.float32)[:, None]          # (L, 1)
    div_term = jnp.exp(
        jnp.arange(0, d_model, 2, dtype=jnp.float32) * (-math.log(10000.0) / d_model)
    )                                                                        # (ceil(D/2),)
    pe = jnp.zeros((max_seq_len, d_model), dtype=jnp.float32)
    pe = pe.at[:, 0::2].set(jnp.sin(position * div_term))
    if d_model % 2 == 0:
        pe = pe.at[:, 1::2].set(jnp.cos(position * div_term))
    else:
        pe = pe.at[:, 1::2].set(jnp.cos(position * div_term[:-1]))
    return pe[None, :, :]                                                    # (1, L, D)


def _add_pe_kernel(x_ref, pe_ref, o_ref):
    # x_ref: (TB, TF) (or (TB, S, D)); pe_ref: (1, TF) (or (1, S, D)).
    # Plain VPU add; pe broadcasts over the leading (sublane/batch) dim with no
    # in-kernel reshape.
    o_ref[...] = x_ref[...] + pe_ref[...]


def _largest_divisor_leq(n: int, cap: int) -> int:
    """Largest divisor of n that is <= cap (>= 1)."""
    best = 1
    d = 1
    while d * d <= n:
        if n % d == 0:
            for c in (d, n // d):
                if c <= cap and c > best:
                    best = c
        d += 1
    return best


def _pick_row_tile(b: int, cap: int) -> int:
    """Largest divisor of b <= cap that is b itself or a multiple of 8.

    Keeps the second-to-last dim of every 2-D block (8,128)-friendly.
    Falls back to the full extent if nothing fits the soft budget.
    """
    if b <= cap:
        return b
    best = 0
    d = 1
    while d * d <= b:
        if b % d == 0:
            for c in (d, b // d):
                if c <= cap and c % 8 == 0 and c > best:
                    best = c
        d += 1
    return best if best > 0 else b


# Keep each f32 block <= ~2 MiB so (2x x-tile + 2x out-tile + pe) stays well
# under v5e's 16 MiB default scoped VMEM and v7x's 32 MiB (64 MiB physical).
_BLOCK_BUDGET_ELEMS = (2 * 1024 * 1024) // 4          # 512K f32 elements
_VMEM_LIMIT_BYTES = 32 * 1024 * 1024                  # safe on v5e/v6e/v7x


def positional_embedding_forward(x: jnp.ndarray, pe_full: jnp.ndarray) -> jnp.ndarray:
    """x: (B, S, D); pe_full: (1, max_seq_len, D). Returns x + pe[:, :S]."""
    B, S, D = x.shape
    F = S * D
    pe = pe_full[0, :S, :]                             # (S, D) glue slice

    if F % 128 == 0:
        # --- Lane-dense path: flatten (S, D) into the last (lane) axis. ---
        x2 = x.reshape(B, F)
        pe2 = pe.reshape(1, F)

        tf_cap_units = max(1, _BLOCK_BUDGET_ELEMS // 128)
        TF = 128 * _largest_divisor_leq(F // 128, tf_cap_units)
        tb_cap = max(1, _BLOCK_BUDGET_ELEMS // TF)
        TB = _pick_row_tile(B, tb_cap)
        grid = (B // TB, F // TF)

        out = pl.pallas_call(
            _add_pe_kernel,
            out_shape=jax.ShapeDtypeStruct((B, F), x.dtype),
            grid_spec=pltpu.PrefetchScalarGridSpec(
                num_scalar_prefetch=0,
                grid=grid,
                in_specs=[
                    pl.BlockSpec((TB, TF), lambda b, f: (b, f)),   # x tile
                    pl.BlockSpec((1, TF), lambda b, f: (0, f)),    # shared pe tile
                ],
                out_specs=pl.BlockSpec((TB, TF), lambda b, f: (b, f)),
            ),
            compiler_params=pltpu.CompilerParams(
                dimension_semantics=("parallel", "parallel"),
                vmem_limit_bytes=_VMEM_LIMIT_BYTES,
            ),
        )(x2, pe2)
        return out.reshape(B, S, D)

    # --- Fallback (F not a multiple of 128): keep (B, S, D) blocks, but pack
    #     multiple batch rows per grid step to amortize per-step overhead. ---
    tb_cap = max(1, _BLOCK_BUDGET_ELEMS // F)
    TB = _largest_divisor_leq(B, tb_cap)
    grid = (B // TB,)

    out = pl.pallas_call(
        _add_pe_kernel,
        out_shape=jax.ShapeDtypeStruct((B, S, D), x.dtype),
        grid_spec=pltpu.PrefetchScalarGridSpec(
            num_scalar_prefetch=0,
            grid=grid,
            in_specs=[
                pl.BlockSpec((TB, S, D), lambda b: (b, 0, 0)),
                pl.BlockSpec((1, S, D), lambda b: (0, 0, 0)),
            ],
            out_specs=pl.BlockSpec((TB, S, D), lambda b: (b, 0, 0)),
        ),
        compiler_params=pltpu.CompilerParams(
            dimension_semantics=("parallel",),
            vmem_limit_bytes=_VMEM_LIMIT_BYTES,
        ),
    )(x, pe[None, :, :])
    return out


if __name__ == "__main__":
    # Small shapes consistent with forward(x): (batch, seq_len, feature_dim)
    B, S, D = 2, 8, 32
    MAX_SEQ_LEN = 1024

    key = jax.random.PRNGKey(0)
    x = jax.random.normal(key, (B, S, D), dtype=jnp.float32)

    pe_full = _build_sinusoidal_pe(MAX_SEQ_LEN, D)     # deterministic buffer init

    out = positional_embedding_forward(x, pe_full)
    out = jax.block_until_ready(out)

    # sanity check against plain-JAX reference
    ref = x + pe_full[:, :S, :]
    assert out.shape == (B, S, D)
    assert jnp.allclose(out, ref, atol=1e-6), "mismatch vs reference"

    # TODO(synk): training-mode dropout (p > 0) not implemented; module default
    # p=0.0 makes it the identity, matching this inference forward pass.
    print("KERNEL_OK")
</pallas_src>

<mosaic_0001>
module attributes {stable_mosaic.version = 11 : i64} {
  func.func @_add_pe_kernel(%arg0: i32, %arg1: i32, %arg2: memref<2x256xf32, #tpu.memory_space<vmem>>, %arg3: memref<1x256xf32, #tpu.memory_space<vmem>>, %arg4: memref<2x256xf32, #tpu.memory_space<vmem>>) attributes {dimension_semantics = [#tpu.dimension_semantics<parallel>, #tpu.dimension_semantics<parallel>], iteration_bounds = array<i64: 1, 1>, scalar_prefetch = 0 : i64, scratch_operands = 0 : i64, tpu.core_type = #tpu.core_type<tc>, window_params = [{transform_indices = @transform_0, window_bounds = array<i64: 2, 256>}, {transform_indices = @transform_1, window_bounds = array<i64: 1, 256>}, {transform_indices = @transform_2, window_bounds = array<i64: 2, 256>}]} {
    %c0 = arith.constant 0 : index
    %c0_0 = arith.constant 0 : index
    %0 = vector.load %arg2[%c0, %c0_0] : memref<2x256xf32, #tpu.memory_space<vmem>>, vector<2x256xf32>
    %c0_1 = arith.constant 0 : index
    %c0_2 = arith.constant 0 : index
    %1 = vector.load %arg3[%c0_1, %c0_2] : memref<1x256xf32, #tpu.memory_space<vmem>>, vector<1x256xf32>
    %2 = vector.broadcast %1 : vector<1x256xf32> to vector<2x256xf32>
    %3 = arith.addf %0, %2 : vector<2x256xf32>
    %c0_3 = arith.constant 0 : index
    %c0_4 = arith.constant 0 : index
    %4 = vector.load %arg4[%c0_3, %c0_4] : memref<2x256xf32, #tpu.memory_space<vmem>>, vector<2x256xf32>
    tpu.vector_store %arg4[%c0_3, %c0_4], %3 {strides = array<i32>} : memref<2x256xf32, #tpu.memory_space<vmem>>, vector<2x256xf32>,
    return
  }
  func.func @transform_0(%arg0: i32, %arg1: i32) -> (i32, i32) {
    %c0_i32 = arith.constant 0 : i32
    return %arg0, %arg1 : i32, i32
  }
  func.func @transform_1(%arg0: i32, %arg1: i32) -> (i32, i32) {
    %c0_i32 = arith.constant 0 : i32
    %c0_i32_0 = arith.constant 0 : i32
    return %c0_i32, %arg1 : i32, i32
  }
  func.func @transform_2(%arg0: i32, %arg1: i32) -> (i32, i32) {
    %c0_i32 = arith.constant 0 : i32
    return %arg0, %arg1 : i32, i32
  }
}

</mosaic_0001>

<bundles_post_ra>
// kernel: tpu_custom_call.1
= control target key start
LH: loop header
LB: loop body
LE: loop exit
PB: predicated region body
PF: predicated region fallthrough
CT: control target
= control target key end

     0   :  { %7 = vsyncpa [#allocation3], 0  ;;  %s177_s0 = inlined_call_operand.hbm [shape: f32[2,256], index: 0, kind: input, shape index: {}]   ;;  %s178_s1 = inlined_call_operand.hbm [shape: f32[1,256], index: 1, kind: input, shape index: {}]   ;;  %s179_s2 = inlined_call_operand.hbm [shape: f32[2,256], index: 2, kind: output, shape index: {}]  }
   0x1   :  { %8 = vsyncpa [#allocation6], 0 }
   0x2   :  { %9 = vsyncpa [#allocation4], 0  ;;  %s15_s11 = sshll.u32 %s177_s0, 4  ;;  %s150_s12 = smov [#allocation2]   ;;  %s16_s11 = int_to_ptr.hbm [resolvable:$true] %s15_s11 }
   0x3   :  { %s17_s13 = sshll.u32 %s150_s12, 4  ;;  %s26_s16 = sshll.u32 %s178_s1, 4  ;;  %s18_s13 = int_to_ptr.vmem [resolvable:$true] %s17_s13  ;;  %s27_s16 = int_to_ptr.hbm [resolvable:$true] %s26_s16 }
   0x4   :  { %20 = dma.hbm_to_vmem [thread:$0]  %s16_s11, 64, %s18_s13, [#allocation3]  }
   0x5   :  { %s151_s17 = smov [#allocation5]  }
   0x6   :  { %s28_s18 = sshll.u32 %s151_s17, 4  ;;  %s29_s18 = int_to_ptr.vmem [resolvable:$true] %s28_s18 }
   0x7   :  { %31 = dma.hbm_to_vmem [thread:$0]  %s27_s16, 32, %s29_s18, [#allocation6]  }
   0x8   :  { %144 = dma.done.wait [#allocation3], 64  }
   0x9   :  { %145 = vsyncadd [#allocation3], 4294967232 }
   0xa   :  { %146 = dma.done.wait [#allocation6], 32  }
   0xb   :  { %147 = vsyncadd [#allocation6], 4294967264  ;;  %v41_v0 = vld [vmem:[#allocation5] sm:$0x3]  ;;  %vm46_vm0 = vcmask 1041408   ;;  %s152_s0 = smov [#allocation7]  }
   0xc   :  { %v43_v1 = vperm.slane %v41_v0, 0  ;;  %v44_v2 = vperm.slane %v41_v0, 1  ;;  %v40_v3 = vld [vmem:[#allocation2] sm:$0xf]  ;;  %s56_s19 = sshll.u32 %s152_s0, 4  ;;  %s58_s21 = sshll.u32 %s179_s2, 4  ;;  %s57_s19 = int_to_ptr.vmem [resolvable:$true] %s56_s19  ;;  %s59_s21 = int_to_ptr.hbm [resolvable:$true] %s58_s21 }
   0xe   :  { %v45_v4 = vrot.slane %v44_v2, 6 }
  0x10   :  { %v47_v5 = vsel %vm46_vm0, %v43_v1, %v45_v4 }
  0x11   :  { %v49_v6 = vadd.f32 %v47_v5, %v40_v3 }
  0x13   :  { %50 = vst [vmem:[#allocation7] sm:$0xf] %v49_v6 }
  0x14   :  { %61 = dma.vmem_to_hbm [thread:$0]  %s57_s19, 64, %s59_s21, [#allocation4]  }
  0x15   :  { %148 = dma.done.wait [#allocation4], 64  }
  0x16   :  { %149 = vsyncadd [#allocation4], 4294967232 }
  0x17   :  { %66 = vsyncpa [#allocation3], 1 }
  0x18   :  { %67 = vsyncpa [#allocation6], 1 }
  0x19   :  { %68 = vsyncpa [#allocation4], 1 }

</bundles_post_ra>
